<compile_context>
chip_gen: v5e
topology: v5e:2x2
jax: 0.10.0
libtpu: 0.0.40
codegen_flags: <defaults>
</compile_context>

<pallas_src>
import functools
import math

import jax
import jax.numpy as jnp
from jax import lax
from jax.experimental import pallas as pl
from jax.experimental.pallas import tpu as pltpu


# bf16 MXU inputs + f32 accumulation; elementwise math stays f32.
MXU_IN_DTYPE = jnp.bfloat16

_COMPILER_PARAMS = pltpu.CompilerParams(vmem_limit_bytes=32 * 1024 * 1024)


def _f32_dot(a_bf, b_bf, contract=(1, 0)):
    """MXU matmul on already-bf16 operands, f32 accumulation, no transpose."""
    return lax.dot_general(
        a_bf,
        b_bf,
        dimension_numbers=(((contract[0],), (contract[1],)), ((), ())),
        preferred_element_type=jnp.float32,
    )


def _sigmoid_eup(x):
    # sigmoid(x) == 0.5 * (tanh(x/2) + 1); tanh lowers to the EUP slot
    # (separate VLIW slot from the VPU), so the NxN sigmoid is ~free
    # behind the MXU work.
    return 0.5 * (jnp.tanh(0.5 * x) + 1.0)


# ---------------------------------------------------------------------------
# Kernels
# ---------------------------------------------------------------------------
def _gnn_layer_kernel(x_ref, w_ref, adj_ref, out_ref, *, active):
    # GNNLayer.forward: support = (tanh of) X @ W ; out = adj @ support
    # x/w/adj arrive already bf16 (pre-cast in the wrapper).
    support = _f32_dot(x_ref[...], w_ref[...])
    if active:
        support = jnp.tanh(support)
    out_ref[...] = _f32_dot(
        adj_ref[...], support.astype(MXU_IN_DTYPE)
    ).astype(out_ref.dtype)


def _igae_decoder_fused_kernel(z_ref, w4_ref, w5_ref, w6_ref, adj_ref,
                               z_hat_ref, z_hat_adj_ref):
    # Three GNNLayer stages (active=True) + sigmoid gram in one program.
    adj_bf = adj_ref[...]  # already bf16; read once, reused for all 3 stages.

    def stage(x_bf, w_ref):
        support_bf = jnp.tanh(_f32_dot(x_bf, w_ref[...])).astype(MXU_IN_DTYPE)
        return _f32_dot(adj_bf, support_bf)  # f32 result

    z1 = stage(z_ref[...], w4_ref)
    z2 = stage(z1.astype(MXU_IN_DTYPE), w5_ref)
    z_hat = stage(z2.astype(MXU_IN_DTYPE), w6_ref)

    z_hat_ref[...] = z_hat.astype(z_hat_ref.dtype)

    # Single bf16 cast of z_hat shared by both gram operands.
    z_hat_bf = z_hat.astype(MXU_IN_DTYPE)
    # Contract dim 1 of both operands -> MXU directly, no .T materialized.
    # TODO(synk): at production shapes, check pl.lower_as_mlir that no hidden
    # XLU transpose/VMEM copy of z_hat_bf is generated for contract=(1,1).
    gram = _f32_dot(z_hat_bf, z_hat_bf, contract=(1, 1))
    z_hat_adj_ref[...] = _sigmoid_eup(gram).astype(z_hat_adj_ref.dtype)


# ---------------------------------------------------------------------------
# Pallas wrappers
# ---------------------------------------------------------------------------
def gnn_layer(features, weight, adj, active=False):
    """Exact GNNLayer.forward: out = adj @ (tanh(X @ W) if active else X @ W)."""
    n, in_f = features.shape
    out_f = weight.shape[1]
    cost = pl.CostEstimate(
        flops=2 * n * in_f * out_f + 2 * n * n * out_f,
        transcendentals=(n * out_f) if active else 0,
        # bf16 inputs (2 B) + f32 output (4 B)
        bytes_accessed=2 * (n * in_f + in_f * out_f + n * n) + 4 * n * out_f,
    )
    return pl.pallas_call(
        functools.partial(_gnn_layer_kernel, active=active),
        out_shape=jax.ShapeDtypeStruct((n, out_f), jnp.float32),
        in_specs=[
            pl.BlockSpec(features.shape, lambda: (0, 0)),
            pl.BlockSpec(weight.shape, lambda: (0, 0)),
            pl.BlockSpec(adj.shape, lambda: (0, 0)),
        ],
        out_specs=pl.BlockSpec((n, out_f), lambda: (0, 0)),
        cost_estimate=cost,
        compiler_params=_COMPILER_PARAMS,
    )(
        features.astype(MXU_IN_DTYPE),  # pre-cast: half the DMA bytes,
        weight.astype(MXU_IN_DTYPE),    # no in-kernel casts of inputs
        adj.astype(MXU_IN_DTYPE),
    )


def igae_decoder_forward(params, z_igae, adj):
    """Fused decoder: three GNNLayer(active=True) stages + sigmoid(z_hat @ z_hat.T)."""
    n, n_z = z_igae.shape
    d1 = params["w4"].shape[1]
    d2 = params["w5"].shape[1]
    n_input = params["w6"].shape[1]

    flops = 0
    for in_f, out_f in ((n_z, d1), (d1, d2), (d2, n_input)):
        flops += 2 * n * in_f * out_f + 2 * n * n * out_f
    flops += 2 * n * n * n_input  # gram
    transcendentals = n * (d1 + d2 + n_input) + n * n
    bytes_accessed = (
        2 * (n * n_z + n_z * d1 + d1 * d2 + d2 * n_input + n * n)  # bf16 in
        + 4 * (n * n_input + n * n)                                 # f32 out
    )
    cost = pl.CostEstimate(flops=flops, transcendentals=transcendentals,
                           bytes_accessed=bytes_accessed)

    return pl.pallas_call(
        _igae_decoder_fused_kernel,
        out_shape=(
            jax.ShapeDtypeStruct((n, n_input), jnp.float32),
            jax.ShapeDtypeStruct((n, n), jnp.float32),
        ),
        in_specs=[
            pl.BlockSpec(z_igae.shape, lambda: (0, 0)),
            pl.BlockSpec(params["w4"].shape, lambda: (0, 0)),
            pl.BlockSpec(params["w5"].shape, lambda: (0, 0)),
            pl.BlockSpec(params["w6"].shape, lambda: (0, 0)),
            pl.BlockSpec(adj.shape, lambda: (0, 0)),
        ],
        out_specs=(
            pl.BlockSpec((n, n_input), lambda: (0, 0)),
            pl.BlockSpec((n, n), lambda: (0, 0)),
        ),
        cost_estimate=cost,
        compiler_params=_COMPILER_PARAMS,
    )(
        z_igae.astype(MXU_IN_DTYPE),
        params["w4"].astype(MXU_IN_DTYPE),
        params["w5"].astype(MXU_IN_DTYPE),
        params["w6"].astype(MXU_IN_DTYPE),
        adj.astype(MXU_IN_DTYPE),
    )


# ---------------------------------------------------------------------------
# Parameter init (xavier_uniform, deterministic)
# ---------------------------------------------------------------------------
def xavier_uniform(key, in_f, out_f):
    bound = math.sqrt(6.0 / (in_f + out_f))
    return jax.random.uniform(
        key, (in_f, out_f), dtype=jnp.float32, minval=-bound, maxval=bound
    )


def make_igae_decoder_params(key, gae_n_dec_1, gae_n_dec_2, n_input, n_z):
    k4, k5, k6 = jax.random.split(key, 3)
    return {
        "w4": xavier_uniform(k4, n_z, gae_n_dec_1),
        "w5": xavier_uniform(k5, gae_n_dec_1, gae_n_dec_2),
        "w6": xavier_uniform(k6, gae_n_dec_2, n_input),
    }


# ---------------------------------------------------------------------------
# Pure-JAX references with the same bf16-input / f32-accumulate numerics
# ---------------------------------------------------------------------------
def _ref_gnn_layer(x, w, adj, active):
    s = _f32_dot(x.astype(MXU_IN_DTYPE), w.astype(MXU_IN_DTYPE))
    if active:
        s = jnp.tanh(s)
    return _f32_dot(adj.astype(MXU_IN_DTYPE), s.astype(MXU_IN_DTYPE))


def _ref_decoder(params, z, adj):
    adj_bf = adj.astype(MXU_IN_DTYPE)

    def stage(x, w):
        s = jnp.tanh(
            _f32_dot(x.astype(MXU_IN_DTYPE), w.astype(MXU_IN_DTYPE))
        ).astype(MXU_IN_DTYPE)
        return _f32_dot(adj_bf, s)

    z1 = stage(z, params["w4"])
    z2 = stage(z1, params["w5"])
    zh = stage(z2, params["w6"])
    zh_bf = zh.astype(MXU_IN_DTYPE)
    return zh, jax.nn.sigmoid(_f32_dot(zh_bf, zh_bf, contract=(1, 1)))


# ---------------------------------------------------------------------------
# Main
# ---------------------------------------------------------------------------
if __name__ == "__main__":
    # Small, lane-dense shapes (N and n_input multiples of 128 so both
    # kernel outputs store with unmasked 128-lane vst).
    N = 128             # number of nodes
    n_z = 32            # latent dim
    gae_n_dec_1 = 64
    gae_n_dec_2 = 128
    n_input = 128       # reconstructed feature dim

    key = jax.random.PRNGKey(0)
    kp, kz, ka = jax.random.split(key, 3)

    params = make_igae_decoder_params(kp, gae_n_dec_1, gae_n_dec_2, n_input, n_z)

    z_igae = jax.random.normal(kz, (N, n_z), dtype=jnp.float32)
    # Symmetric, row-normalized dense adjacency (torch.spmm == dense matmul here).
    a = jax.random.uniform(ka, (N, N), dtype=jnp.float32)
    adj = (a + a.T) * 0.5
    adj = adj / jnp.sum(adj, axis=1, keepdims=True)

    # ---- single GNNLayer: exact module parity for both `active` branches ----
    y_act = gnn_layer(z_igae, params["w4"], adj, active=True)
    y_lin = gnn_layer(z_igae, params["w4"], adj, active=False)
    jax.block_until_ready((y_act, y_lin))
    ref_act = _ref_gnn_layer(z_igae, params["w4"], adj, active=True)
    ref_lin = _ref_gnn_layer(z_igae, params["w4"], adj, active=False)
    assert jnp.allclose(y_act, ref_act, atol=2e-3, rtol=2e-3)
    assert jnp.allclose(y_lin, ref_lin, atol=2e-3, rtol=2e-3)

    # ---- fused decoder (three GNNLayers + sigmoid gram) ----
    z_hat, z_hat_adj = igae_decoder_forward(params, z_igae, adj)
    jax.block_until_ready((z_hat, z_hat_adj))

    zh_ref, zadj_ref = _ref_decoder(params, z_igae, adj)
    assert jnp.allclose(z_hat, zh_ref, atol=2e-3, rtol=2e-3)
    assert jnp.allclose(z_hat_adj, zadj_ref, atol=2e-3, rtol=2e-3)
    assert z_hat.shape == (N, n_input)
    assert z_hat_adj.shape == (N, N)

    print("KERNEL_OK")
</pallas_src>

<mosaic_0001>
module attributes {stable_mosaic.version = 11 : i64} {
  func.func @_gnn_layer_kernel(%arg0: memref<128x32xbf16, #tpu.memory_space<vmem>>, %arg1: memref<32x64xbf16, #tpu.memory_space<vmem>>, %arg2: memref<128x128xbf16, #tpu.memory_space<vmem>>, %arg3: memref<128x64xf32, #tpu.memory_space<vmem>>) attributes {dimension_semantics = [], scalar_prefetch = 0 : i64, scratch_operands = 0 : i64, tpu.core_type = #tpu.core_type<tc>} {
    %c0 = arith.constant 0 : index
    %c0_0 = arith.constant 0 : index
    %0 = vector.load %arg0[%c0, %c0_0] : memref<128x32xbf16, #tpu.memory_space<vmem>>, vector<128x32xbf16>
    %c0_1 = arith.constant 0 : index
    %c0_2 = arith.constant 0 : index
    %1 = vector.load %arg1[%c0_1, %c0_2] : memref<32x64xbf16, #tpu.memory_space<vmem>>, vector<32x64xbf16>
    %cst = arith.constant dense<0.000000e+00> : vector<128x64xf32>
    %2 = tpu.matmul %0, %1, %cst {dimension_numbers = #tpu.dot_dimension_numbers<[1], [0], [0], [1], [0, 0, 1, 1], [], []>} : vector<128x32xbf16>, vector<32x64xbf16>, vector<128x64xf32> -> vector<128x64xf32>
    %3 = math.tanh %2 : vector<128x64xf32>
    %c0_3 = arith.constant 0 : index
    %c0_4 = arith.constant 0 : index
    %4 = vector.load %arg2[%c0_3, %c0_4] : memref<128x128xbf16, #tpu.memory_space<vmem>>, vector<128x128xbf16>
    %5 = arith.truncf %3 : vector<128x64xf32> to vector<128x64xbf16>
    %cst_5 = arith.constant dense<0.000000e+00> : vector<128x64xf32>
    %6 = tpu.matmul %4, %5, %cst_5 {dimension_numbers = #tpu.dot_dimension_numbers<[1], [0], [0], [1], [0, 0, 1, 1], [], []>} : vector<128x128xbf16>, vector<128x64xbf16>, vector<128x64xf32> -> vector<128x64xf32>
    %c0_6 = arith.constant 0 : index
    %c0_7 = arith.constant 0 : index
    %7 = vector.load %arg3[%c0_6, %c0_7] : memref<128x64xf32, #tpu.memory_space<vmem>>, vector<128x64xf32>
    tpu.vector_store %arg3[%c0_6, %c0_7], %6 {strides = array<i32>} : memref<128x64xf32, #tpu.memory_space<vmem>>, vector<128x64xf32>,
    return
  }
}

</mosaic_0001>

<bundles_post_ra>
// kernel: tpu_custom_call.1
= control target key start
LH: loop header
LB: loop body
LE: loop exit
PB: predicated region body
PF: predicated region fallthrough
CT: control target
= control target key end

     0   :  { %vm87_vm0 = vcmask 261120   ;;  %vm298_vm1 = vcmask 523264   ;;  %s601_s1 = inlined_call_operand.vmem [shape: bf16[32,64], index: 1, kind: input, shape index: {}]   ;;  %s602_s0 = inlined_call_operand.vmem [shape: bf16[128,32], index: 0, kind: input, shape index: {}]   ;;  %s603_s2 = inlined_call_operand.vmem [shape: bf16[128,128], index: 2, kind: input, shape index: {}]   ;;  %s604_s3 = inlined_call_operand.vmem [shape: f32[128,64], index: 3, kind: output, shape index: {}]  }
   0x1   :  { %v408_v0 = vld [vmem:[%s601_s1 + $0x8] sm:$0xff]  ;;  %v407_v1 = vld [vmem:[%s601_s1] sm:$0xff]  ;;  %v405_v5 = vld [vmem:[%s602_s0 + $0x30] sm:$0xff] }
   0x2   :  { %118 = vmatpush.bf16.msra.mxu0 %v408_v0  ;;  %417 = vmatpush.bf16.msra.mxu3 %v408_v0  ;;  %v399_v2 = vld [vmem:[%s602_s0] sm:$0xff]  ;;  %v404_v3 = vld [vmem:[%s602_s0 + $0x28] sm:$0xff]  ;;  %v401_v6 = vld [vmem:[%s602_s0 + $0x10] sm:$0xff] }
   0x3   :  { %v400_v4 = vld [vmem:[%s602_s0 + $0x8] sm:$0xff]  ;;  %v406_v7 = vld [vmem:[%s602_s0 + $0x38] sm:$0xff]  ;;  %v403_v9 = vld [vmem:[%s602_s0 + $0x20] sm:$0xff] }
   0x4   :  { %v402_v8 = vld [vmem:[%s602_s0 + $0x18] sm:$0xff]  ;;  %v409_v50 = vld [vmem:[%s603_s2] sm:$0xff]  ;;  %v410_v52 = vld [vmem:[%s603_s2 + $0x8] sm:$0xff] }
   0x5   :  { %v413_v51 = vld [vmem:[%s603_s2 + $0x20] sm:$0xff]  ;;  %v414_v53 = vld [vmem:[%s603_s2 + $0x28] sm:$0xff]  ;;  %v411_v54 = vld [vmem:[%s603_s2 + $0x10] sm:$0xff] }
   0x6   :  { %119 = vmatpush.bf16.msra.mxu0 %v407_v1  ;;  %418 = vmatpush.bf16.msra.mxu3 %v407_v1  ;;  %v415_v55 = vld [vmem:[%s603_s2 + $0x30] sm:$0xff]  ;;  %v412_v56 = vld [vmem:[%s603_s2 + $0x18] sm:$0xff] }
   0x7   :  { %v416_v57 = vld [vmem:[%s603_s2 + $0x38] sm:$0xff] }
   0x9   :  { %359 = vmatmul.msk.bf16.vlgmr.msra.gmra.mxu0 %vm87_vm0, %v399_v2  ;;  %364 = vmatmul.msk.bf16.vlgmr.msra.gmra.mxu3 %vm87_vm0, %v404_v3 }
  0x19   :  { %360 = vmatmul.msk.bf16.gmra.mxu0 %vm87_vm0, %v400_v4  ;;  %365 = vmatmul.msk.bf16.gmra.mxu3 %vm87_vm0, %v405_v5 }
  0x29   :  { %361 = vmatmul.msk.bf16.gmra.mxu0 %vm87_vm0, %v401_v6  ;;  %366 = vmatmul.msk.bf16.gmra.mxu3 %vm87_vm0, %v406_v7 }
  0x39   :  { %362 = vmatmul.msk.bf16.gmra.mxu0 %vm87_vm0, %v402_v8 }
  0x49   :  { %363 = vmatmul.msk.bf16.gmra.mxu0 %vm87_vm0, %v403_v9 }
  0x86   :  { %v121_v10 = vpop.f32.mrf.mxu0 }
  0x87   :  { %427 = vtanh.f32 %v121_v10 }
  0x8c   :  { %v146_v11 = vpop.f32.mrf.mxu3 }
  0x8d   :  { %v428_v13 = vpop.eup %427 }
  0x8e   :  { %v123_v12 = vpop.f32.mrf.mxu0 }
  0x8f   :  { %429 = vtanh.f32 %v123_v12 }
  0x94   :  { %v148_v14 = vpop.f32.mrf.mxu3 }
  0x95   :  { %v430_v15 = vpop.eup %429 }
  0x96   :  { %v126_v16 = vpop.f32.mrf.mxu0  ;;  %v509_v17 = vpack.c.bf16 %v430_v15, %v428_v13 }
  0x9c   :  { %v151_v18 = vpop.f32.mrf.mxu3 }
  0x9e   :  { %v128_v19 = vpop.f32.mrf.mxu0 }
  0xa4   :  { %v153_v20 = vpop.f32.mrf.mxu3 }
  0xa6   :  { %v131_v21 = vpop.f32.mrf.mxu0 }
  0xac   :  { %v156_v22 = vpop.f32.mrf.mxu3 }
  0xad   :  { %431 = vtanh.f32 %v156_v22 }
  0xae   :  { %v133_v23 = vpop.f32.mrf.mxu0 }
  0xb3   :  { %v432_v26 = vpop.eup %431 }
  0xb4   :  { %v158_v24 = vpop.f32.mrf.mxu3 }
  0xb5   :  { %433 = vtanh.f32 %v158_v24 }
  0xb6   :  { %435 = vtanh.f32 %v151_v18  ;;  %v136_v25 = vpop.f32.mrf.mxu0 }
  0xb7   :  { %437 = vtanh.f32 %v153_v20 }
  0xb8   :  { %439 = vtanh.f32 %v146_v11 }
  0xb9   :  { %441 = vtanh.f32 %v148_v14 }
  0xbb   :  { %v434_v27 = vpop.eup %433 }
  0xbc   :  { %v436_v28 = vpop.eup %435  ;;  %v200_v29 = vpack.c.bf16 %v434_v27, %v432_v26 }
  0xbd   :  { %v438_v30 = vpop.eup %437 }
  0xbe   :  { %v138_v31 = vpop.f32.mrf.mxu0  ;;  %249 = vmatpush.bf16.msra.mxu1 %v200_v29  ;;  %419 = vmatpush.bf16.msra.mxu2 %v200_v29  ;;  %v440_v32 = vpop.eup %439  ;;  %v199_v33 = vpack.c.bf16 %v438_v30, %v436_v28 }
  0xbf   :  { %v442_v34 = vpop.eup %441 }
  0xc0   :  { %v198_v35 = vpack.c.bf16 %v442_v34, %v440_v32 }
  0xc2   :  { %250 = vmatpush.bf16.msra.mxu1 %v199_v33  ;;  %420 = vmatpush.bf16.msra.mxu2 %v199_v33 }
  0xc6   :  { %v141_v36 = vpop.f32.mrf.mxu0  ;;  %251 = vmatpush.bf16.msra.mxu1 %v198_v35  ;;  %421 = vmatpush.bf16.msra.mxu2 %v198_v35 }
  0xc7   :  { %443 = vtanh.f32 %v141_v36 }
  0xcd   :  { %v444_v38 = vpop.eup %443 }
  0xce   :  { %v143_v37 = vpop.f32.mrf.mxu0 }
  0xcf   :  { %445 = vtanh.f32 %v143_v37 }
  0xd0   :  { %447 = vtanh.f32 %v138_v31 }
  0xd1   :  { %449 = vtanh.f32 %v136_v25 }
  0xd2   :  { %451 = vtanh.f32 %v133_v23 }
  0xd3   :  { %453 = vtanh.f32 %v131_v21 }
  0xd4   :  { %455 = vtanh.f32 %v128_v19 }
  0xd5   :  { %v446_v39 = vpop.eup %445  ;;  %457 = vtanh.f32 %v126_v16 }
  0xd6   :  { %v197_v40 = vpack.c.bf16 %v446_v39, %v444_v38  ;;  %v448_v41 = vpop.eup %447 }
  0xd7   :  { %v450_v42 = vpop.eup %449 }
  0xd8   :  { %252 = vmatpush.bf16.msra.mxu1 %v197_v40  ;;  %422 = vmatpush.bf16.msra.mxu2 %v197_v40  ;;  %v196_v43 = vpack.c.bf16 %v448_v41, %v450_v42  ;;  %v452_v44 = vpop.eup %451 }
  0xd9   :  { %v454_v45 = vpop.eup %453 }
  0xda   :  { %v195_v46 = vpack.c.bf16 %v452_v44, %v454_v45  ;;  %v456_v47 = vpop.eup %455 }
  0xdb   :  { %v458_v48 = vpop.eup %457 }
  0xdc   :  { %253 = vmatpush.bf16.msra.mxu1 %v196_v43  ;;  %423 = vmatpush.bf16.msra.mxu2 %v196_v43  ;;  %v194_v49 = vpack.c.bf16 %v456_v47, %v458_v48 }
  0xe0   :  { %254 = vmatpush.bf16.msra.mxu1 %v195_v46  ;;  %424 = vmatpush.bf16.msra.mxu2 %v195_v46 }
  0xe4   :  { %255 = vmatpush.bf16.msra.mxu1 %v194_v49  ;;  %425 = vmatpush.bf16.msra.mxu2 %v194_v49 }
  0xe8   :  { %256 = vmatpush.bf16.msra.mxu1 %v509_v17  ;;  %426 = vmatpush.bf16.msra.mxu2 %v509_v17 }
  0xeb   :  { %257 = vmatmul.bf16.vlgmr.msra.gmra.mxu1 %v409_v50  ;;  %277 = vmatmul.bf16.vlgmr.msra.gmra.mxu2 %v413_v51 }
  0xfb   :  { %262 = vmatmul.bf16.gmra.mxu1 %v410_v52  ;;  %282 = vmatmul.bf16.gmra.mxu2 %v414_v53 }
 0x10b   :  { %267 = vmatmul.bf16.gmra.mxu1 %v411_v54  ;;  %287 = vmatmul.bf16.gmra.mxu2 %v415_v55 }
 0x11b   :  { %272 = vmatmul.bf16.gmra.mxu1 %v412_v56  ;;  %292 = vmatmul.bf16.gmra.mxu2 %v416_v57 }
 0x168   :  { %v258_v58 = vpop.f32.mrf.mxu1 }
 0x169   :  { %299 = vst.msk [vmem:[%s604_s3] sm:$0xff] %vm298_vm1, %v258_v58 }
 0x16e   :  { %v278_v59 = vpop.f32.mrf.mxu2 }
 0x16f   :  { %307 = vst.msk [vmem:[%s604_s3 + $0x40] sm:$0xff] %vm298_vm1, %v278_v59 }
 0x170   :  { %v260_v60 = vpop.f32.mrf.mxu1 }
 0x171   :  { %300 = vst.msk [vmem:[%s604_s3 + $0x8] sm:$0xff] %vm298_vm1, %v260_v60 }
 0x176   :  { %v280_v61 = vpop.f32.mrf.mxu2 }
 0x177   :  { %308 = vst.msk [vmem:[%s604_s3 + $0x48] sm:$0xff] %vm298_vm1, %v280_v61 }
 0x178   :  { %v263_v62 = vpop.f32.mrf.mxu1 }
 0x179   :  { %301 = vst.msk [vmem:[%s604_s3 + $0x10] sm:$0xff] %vm298_vm1, %v263_v62 }
 0x17e   :  { %v283_v63 = vpop.f32.mrf.mxu2 }
 0x17f   :  { %309 = vst.msk [vmem:[%s604_s3 + $0x50] sm:$0xff] %vm298_vm1, %v283_v63 }
 0x180   :  { %v265_v0 = vpop.f32.mrf.mxu1 }
 0x181   :  { %302 = vst.msk [vmem:[%s604_s3 + $0x18] sm:$0xff] %vm298_vm1, %v265_v0 }
 0x186   :  { %v285_v1 = vpop.f32.mrf.mxu2 }
 0x187   :  { %310 = vst.msk [vmem:[%s604_s3 + $0x58] sm:$0xff] %vm298_vm1, %v285_v1 }
 0x188   :  { %v268_v2 = vpop.f32.mrf.mxu1 }
 0x189   :  { %303 = vst.msk [vmem:[%s604_s3 + $0x20] sm:$0xff] %vm298_vm1, %v268_v2 }
 0x18e   :  { %v288_v3 = vpop.f32.mrf.mxu2 }
 0x18f   :  { %311 = vst.msk [vmem:[%s604_s3 + $0x60] sm:$0xff] %vm298_vm1, %v288_v3 }
 0x190   :  { %v270_v4 = vpop.f32.mrf.mxu1 }
 0x191   :  { %304 = vst.msk [vmem:[%s604_s3 + $0x28] sm:$0xff] %vm298_vm1, %v270_v4 }
 0x196   :  { %v290_v5 = vpop.f32.mrf.mxu2 }
 0x197   :  { %312 = vst.msk [vmem:[%s604_s3 + $0x68] sm:$0xff] %vm298_vm1, %v290_v5 }
 0x198   :  { %v273_v6 = vpop.f32.mrf.mxu1 }
 0x199   :  { %305 = vst.msk [vmem:[%s604_s3 + $0x30] sm:$0xff] %vm298_vm1, %v273_v6 }
 0x19e   :  { %v293_v7 = vpop.f32.mrf.mxu2 }
 0x19f   :  { %313 = vst.msk [vmem:[%s604_s3 + $0x70] sm:$0xff] %vm298_vm1, %v293_v7 }
 0x1a0   :  { %v275_v8 = vpop.f32.mrf.mxu1 }
 0x1a1   :  { %306 = vst.msk [vmem:[%s604_s3 + $0x38] sm:$0xff] %vm298_vm1, %v275_v8 }
 0x1a6   :  { %v295_v9 = vpop.f32.mrf.mxu2 }
 0x1a7   :  { %314 = vst.msk [vmem:[%s604_s3 + $0x78] sm:$0xff] %vm298_vm1, %v295_v9 }

</bundles_post_ra>
